<compile_context>
chip_gen: v7x
topology: tpu7x:2x2x1
jax: 0.10.0
libtpu: 0.0.40
codegen_flags: <defaults>
</compile_context>

<pallas_src>
import jax
import jax.numpy as jnp
from jax.experimental import pallas as pl
from jax.experimental.pallas import tpu as pltpu


def _round_up(x: int, m: int) -> int:
    return (x + m - 1) // m * m


# ---------------------------------------------------------------------------
# Kernels
# ---------------------------------------------------------------------------
def _encoder_kernel_fused(x_ref, w1_ref, b1_ref, w2_ref, b2_ref, z_ref):
    # x arrives in f32 and is cast to bf16 on the VPU (cheap: kernel is
    # HBM-bound), so the wrapper never materializes a bf16 copy of x in HBM.
    x = x_ref[...].astype(jnp.bfloat16)                                # (TB, F)
    h = jnp.dot(x, w1_ref[...], preferred_element_type=jnp.float32)    # (TB, Hp)
    h = jnp.maximum(h + b1_ref[...], 0.0)
    z = jnp.dot(h.astype(jnp.bfloat16), w2_ref[...],
                preferred_element_type=jnp.float32)                    # (TB, L)
    z_ref[...] = (z + b2_ref[...]).astype(z_ref.dtype)


def _encoder_kernel_ktiled(x_ref, w1_ref, b1_ref, w2_ref, b2_ref, z_ref,
                           acc_ref):
    # Grid = (batch tiles [parallel], K tiles [arbitrary, innermost]).
    k = pl.program_id(1)

    @pl.when(k == 0)
    def _():
        acc_ref[...] = jnp.zeros_like(acc_ref)

    x = x_ref[...].astype(jnp.bfloat16)                                # (TB, TK)
    acc_ref[...] += jnp.dot(x, w1_ref[...],
                            preferred_element_type=jnp.float32)

    @pl.when(k == pl.num_programs(1) - 1)
    def _():
        h = jnp.maximum(acc_ref[...] + b1_ref[...], 0.0)
        z = jnp.dot(h.astype(jnp.bfloat16), w2_ref[...],
                    preferred_element_type=jnp.float32)
        z_ref[...] = (z + b2_ref[...]).astype(z_ref.dtype)


# ---------------------------------------------------------------------------
# Tiling / VMEM budgeting
# ---------------------------------------------------------------------------
def _vmem_budget_bytes() -> int:
    try:
        cap = int(pltpu.get_tpu_info().vmem_capacity_bytes)
    except Exception:
        cap = 64 << 20                      # v7x-safe fallback
    return (cap * 3) // 4                   # leave the compiler headroom


def _pick_tiles(B, F, Hp, L, x_itemsize, budget):
    # K (in_features) tile: only tile when F is large AND cleanly divisible,
    # so a ragged K block can never contaminate the reduction.
    TK = F
    if F > 4096 and F % 128 == 0:
        for cand in (4096, 2048, 1024, 512):
            if F % cand == 0:
                TK = cand
                break
    ktiled = TK != F

    Lp = _round_up(L, 128)                  # lane padding as seen inside VMEM

    def vmem_need(tb):
        n = 2 * tb * TK * x_itemsize        # x tile (double-buffered)
        n += 2 * TK * Hp * 2                # w1 block, bf16
        n += 2 * Hp * Lp * 2                # w2 (resident)
        n += 2 * tb * Lp * 4                # out tile, f32
        n += 4 * 8 * max(Hp, Lp) * 4        # biases (sublane/lane padded)
        if ktiled:
            n += tb * Hp * 4                # f32 accumulator scratch
        return n

    B_ru = _round_up(B, 8)
    TB = 8
    for t in (1024, 512, 256, 128, 64, 32, 16, 8):
        if t > B_ru:
            continue
        if t >= 256 and 2 * t > B_ru:
            continue                        # keep >=2 batch tiles (v7x: 2 TCs)
        if vmem_need(t) <= budget:
            TB = t
            break
    return TB, TK, ktiled, vmem_need(TB)


# ---------------------------------------------------------------------------
# Forward
# ---------------------------------------------------------------------------
@jax.jit
def encoder_forward(x_nchw, w1p, b1p, w2p, b2p):
    """Fused encoder forward.

    x_nchw: (B, C, H, W) float32.
    w1p: (F, Hp) bf16, b1p: (1, Hp) f32   -- hidden zero-padded to 128 multiple
    w2p: (Hp, L) bf16, b2p: (1, L)  f32   -- latent kept at its true size
    Returns (B, L) float32.
    """
    B = x_nchw.shape[0]
    F = w1p.shape[0]
    Hp = w1p.shape[1]
    L = w2p.shape[1]

    # Flatten NCHW -> (B, F): pure trailing-dims flatten, free in XLA.
    x2d = x_nchw.reshape(B, F)

    budget = _vmem_budget_bytes()
    TB, TK, ktiled, need_bytes = _pick_tiles(B, F, Hp, L,
                                             x2d.dtype.itemsize, budget)
    n_b = pl.cdiv(B, TB)

    vmem_limit = int(min(budget, max(16 << 20, (need_bytes * 5) // 4)))
    vmem_limit = max(vmem_limit, need_bytes)    # never below the real need

    cost = pl.CostEstimate(
        flops=2 * B * F * Hp + 2 * B * Hp * L,
        transcendentals=0,
        bytes_accessed=(B * F * x2d.dtype.itemsize + F * Hp * 2 + Hp * L * 2
                        + (Hp + L) * 4 + B * L * 4),
    )

    out_shape = jax.ShapeDtypeStruct((B, L), jnp.float32)

    if not ktiled:
        z = pl.pallas_call(
            _encoder_kernel_fused,
            out_shape=out_shape,
            grid=(n_b,),
            in_specs=[
                pl.BlockSpec((TB, F), lambda i: (i, 0)),   # x marches over B
                # Constant-index weights/biases are fetched once and stay
                # resident. (Single-buffering them would shave a bit more
                # VMEM on v7x but is unnecessary at these sizes.)
                pl.BlockSpec((F, Hp), lambda i: (0, 0)),
                pl.BlockSpec((1, Hp), lambda i: (0, 0)),
                pl.BlockSpec((Hp, L), lambda i: (0, 0)),
                pl.BlockSpec((1, L), lambda i: (0, 0)),
            ],
            out_specs=pl.BlockSpec((TB, L), lambda i: (i, 0)),
            compiler_params=pltpu.CompilerParams(
                dimension_semantics=("parallel",),
                vmem_limit_bytes=vmem_limit,
            ),
            cost_estimate=cost,
        )(x2d, w1p, b1p, w2p, b2p)
    else:
        n_k = F // TK                              # exact by construction
        z = pl.pallas_call(
            _encoder_kernel_ktiled,
            out_shape=out_shape,
            grid=(n_b, n_k),
            in_specs=[
                pl.BlockSpec((TB, TK), lambda i, k: (i, k)),
                pl.BlockSpec((TK, Hp), lambda i, k: (k, 0)),
                pl.BlockSpec((1, Hp), lambda i, k: (0, 0)),
                pl.BlockSpec((Hp, L), lambda i, k: (0, 0)),
                pl.BlockSpec((1, L), lambda i, k: (0, 0)),
            ],
            out_specs=pl.BlockSpec((TB, L), lambda i, k: (i, 0)),
            scratch_shapes=[pltpu.VMEM((TB, Hp), jnp.float32)],
            compiler_params=pltpu.CompilerParams(
                dimension_semantics=("parallel", "arbitrary"),
                vmem_limit_bytes=vmem_limit,
            ),
            cost_estimate=cost,
        )(x2d, w1p, b1p, w2p, b2p)

    return z


class BaseEncoderPallas:
    """Concrete stand-in for `_BaseEncoder(latent_dims, variational=False)`."""

    def __init__(self, in_features, hidden, latent_dims, variational=False,
                 key=None):
        # TODO(synk): variational=True would add a (mu, logvar) two-head
        # output; the abstract base gives no concrete spec for it, so only the
        # deterministic path is implemented here.
        assert not variational
        if key is None:
            key = jax.random.PRNGKey(0)
        self.latent_dims = latent_dims
        self.variational = variational
        self.in_features = in_features
        self.hidden = hidden

        k1, k2 = jax.random.split(key)
        # Deterministic, PyTorch-nn.Linear-like scaled init (f32 masters).
        w1 = (jax.random.normal(k1, (in_features, hidden), jnp.float32)
              / jnp.sqrt(in_features))
        b1 = jnp.zeros((hidden,), jnp.float32)
        w2 = (jax.random.normal(k2, (hidden, latent_dims), jnp.float32)
              / jnp.sqrt(hidden))
        b2 = jnp.zeros((latent_dims,), jnp.float32)
        self.w1, self.b1, self.w2, self.b2 = w1, b1, w2, b2

        # One-time prep: pad hidden to a full-lane multiple (exact: padded
        # bias is 0 so ReLU(0)=0 and the padded w2 rows are 0) and cast the
        # matmul operands to bf16. The latent dim stays at its true size so
        # the kernel only ever writes the bytes the caller needs.
        Hp = _round_up(hidden, 128)
        self.w1p = jnp.pad(w1, ((0, 0), (0, Hp - hidden))).astype(jnp.bfloat16)
        self.b1p = jnp.pad(b1, (0, Hp - hidden)).reshape(1, Hp)
        self.w2p = jnp.pad(w2, ((0, Hp - hidden), (0, 0))).astype(jnp.bfloat16)
        self.b2p = b2.reshape(1, latent_dims)

    def __call__(self, x_nchw):
        return encoder_forward(x_nchw, self.w1p, self.b1p, self.w2p, self.b2p)


if __name__ == "__main__":
    key = jax.random.PRNGKey(0)
    kx, kp = jax.random.split(key)

    B, C, H, W = 2, 4, 16, 16          # NCHW input, like the PyTorch module
    hidden, latent_dims = 64, 8
    in_features = C * H * W            # 1024 (lane-aligned)

    x = jax.random.normal(kx, (B, C, H, W), jnp.float32)
    enc = BaseEncoderPallas(in_features, hidden, latent_dims,
                            variational=False, key=kp)

    z = enc(x)
    jax.block_until_ready(z)
    assert z.shape == (B, latent_dims)

    # Reference check in plain JAX with the same bf16-operand / f32-accumulate
    # recipe the kernel uses.
    x2d = x.reshape(B, in_features).astype(jnp.bfloat16)
    h_ref = jnp.maximum(
        jnp.dot(x2d, enc.w1.astype(jnp.bfloat16),
                preferred_element_type=jnp.float32) + enc.b1, 0.0)
    z_ref = jnp.dot(h_ref.astype(jnp.bfloat16), enc.w2.astype(jnp.bfloat16),
                    preferred_element_type=jnp.float32) + enc.b2
    assert jnp.allclose(z, z_ref, atol=1e-2, rtol=1e-2)

    # Looser sanity check against the pure-f32 math (bf16 operand rounding).
    h_f32 = jnp.maximum(x.reshape(B, in_features) @ enc.w1 + enc.b1, 0.0)
    z_f32 = h_f32 @ enc.w2 + enc.b2
    assert jnp.allclose(z, z_f32, atol=5e-2, rtol=5e-2)

    print("KERNEL_OK")
</pallas_src>

<mosaic_0001>
module attributes {stable_mosaic.version = 11 : i64} {
  func.func @_encoder_kernel_fused(%arg0: i32, %arg1: memref<8x1024xf32, #tpu.memory_space<vmem>>, %arg2: memref<1024x128xbf16, #tpu.memory_space<vmem>>, %arg3: memref<1x128xf32, #tpu.memory_space<vmem>>, %arg4: memref<128x8xbf16, #tpu.memory_space<vmem>>, %arg5: memref<1x8xf32, #tpu.memory_space<vmem>>, %arg6: memref<8x8xf32, #tpu.memory_space<vmem>>) attributes {dimension_semantics = [#tpu.dimension_semantics<parallel>], iteration_bounds = array<i64: 1>, scalar_prefetch = 0 : i64, scratch_operands = 0 : i64, tpu.core_type = #tpu.core_type<tc>, window_params = [{transform_indices = @transform_0, window_bounds = array<i64: 8, 1024>}, {pipeline_mode = #tpu.pipeline_mode<synchronous>, transform_indices = @transform_1, window_bounds = array<i64: 1024, 128>}, {pipeline_mode = #tpu.pipeline_mode<synchronous>, transform_indices = @transform_2, window_bounds = array<i64: 1, 128>}, {pipeline_mode = #tpu.pipeline_mode<synchronous>, transform_indices = @transform_3, window_bounds = array<i64: 128, 8>}, {pipeline_mode = #tpu.pipeline_mode<synchronous>, transform_indices = @transform_4, window_bounds = array<i64: 1, 8>}, {transform_indices = @transform_5, window_bounds = array<i64: 8, 8>}]} {
    %c0 = arith.constant 0 : index
    %c0_0 = arith.constant 0 : index
    %0 = vector.load %arg1[%c0, %c0_0] : memref<8x1024xf32, #tpu.memory_space<vmem>>, vector<8x1024xf32>
    %1 = arith.truncf %0 : vector<8x1024xf32> to vector<8x1024xbf16>
    %c0_1 = arith.constant 0 : index
    %c0_2 = arith.constant 0 : index
    %2 = vector.load %arg2[%c0_1, %c0_2] : memref<1024x128xbf16, #tpu.memory_space<vmem>>, vector<1024x128xbf16>
    %cst = arith.constant dense<0.000000e+00> : vector<8x128xf32>
    %3 = tpu.matmul %1, %2, %cst {dimension_numbers = #tpu.dot_dimension_numbers<[1], [0], [0], [1], [0, 0, 1, 1], [], []>} : vector<8x1024xbf16>, vector<1024x128xbf16>, vector<8x128xf32> -> vector<8x128xf32>
    %c0_3 = arith.constant 0 : index
    %c0_4 = arith.constant 0 : index
    %4 = vector.load %arg3[%c0_3, %c0_4] : memref<1x128xf32, #tpu.memory_space<vmem>>, vector<1x128xf32>
    %5 = vector.broadcast %4 : vector<1x128xf32> to vector<8x128xf32>
    %6 = arith.addf %3, %5 : vector<8x128xf32>
    %cst_5 = arith.constant 0.000000e+00 : f32
    %7 = vector.broadcast %cst_5 : f32 to vector<8x128xf32>
    %8 = arith.maximumf %6, %7 : vector<8x128xf32>
    %9 = arith.truncf %8 : vector<8x128xf32> to vector<8x128xbf16>
    %c0_6 = arith.constant 0 : index
    %c0_7 = arith.constant 0 : index
    %10 = vector.load %arg4[%c0_6, %c0_7] : memref<128x8xbf16, #tpu.memory_space<vmem>>, vector<128x8xbf16>
    %cst_8 = arith.constant dense<0.000000e+00> : vector<8x8xf32>
    %11 = tpu.matmul %9, %10, %cst_8 {dimension_numbers = #tpu.dot_dimension_numbers<[1], [0], [0], [1], [0, 0, 1, 1], [], []>} : vector<8x128xbf16>, vector<128x8xbf16>, vector<8x8xf32> -> vector<8x8xf32>
    %c0_9 = arith.constant 0 : index
    %c0_10 = arith.constant 0 : index
    %12 = vector.load %arg5[%c0_9, %c0_10] : memref<1x8xf32, #tpu.memory_space<vmem>>, vector<1x8xf32>
    %13 = vector.broadcast %12 : vector<1x8xf32> to vector<8x8xf32>
    %14 = arith.addf %11, %13 : vector<8x8xf32>
    %c0_11 = arith.constant 0 : index
    %c0_12 = arith.constant 0 : index
    %15 = vector.load %arg6[%c0_11, %c0_12] : memref<8x8xf32, #tpu.memory_space<vmem>>, vector<8x8xf32>
    tpu.vector_store %arg6[%c0_11, %c0_12], %14 {strides = array<i32>} : memref<8x8xf32, #tpu.memory_space<vmem>>, vector<8x8xf32>,
    return
  }
  func.func @transform_0(%arg0: i32) -> (i32, i32) {
    %c0_i32 = arith.constant 0 : i32
    %c0_i32_0 = arith.constant 0 : i32
    return %arg0, %c0_i32 : i32, i32
  }
  func.func @transform_1(%arg0: i32) -> (i32, i32) {
    %c0_i32 = arith.constant 0 : i32
    %c0_i32_0 = arith.constant 0 : i32
    %c0_i32_1 = arith.constant 0 : i32
    return %c0_i32, %c0_i32_0 : i32, i32
  }
  func.func @transform_2(%arg0: i32) -> (i32, i32) {
    %c0_i32 = arith.constant 0 : i32
    %c0_i32_0 = arith.constant 0 : i32
    %c0_i32_1 = arith.constant 0 : i32
    return %c0_i32, %c0_i32_0 : i32, i32
  }
  func.func @transform_3(%arg0: i32) -> (i32, i32) {
    %c0_i32 = arith.constant 0 : i32
    %c0_i32_0 = arith.constant 0 : i32
    %c0_i32_1 = arith.constant 0 : i32
    return %c0_i32, %c0_i32_0 : i32, i32
  }
  func.func @transform_4(%arg0: i32) -> (i32, i32) {
    %c0_i32 = arith.constant 0 : i32
    %c0_i32_0 = arith.constant 0 : i32
    %c0_i32_1 = arith.constant 0 : i32
    return %c0_i32, %c0_i32_0 : i32, i32
  }
  func.func @transform_5(%arg0: i32) -> (i32, i32) {
    %c0_i32 = arith.constant 0 : i32
    %c0_i32_0 = arith.constant 0 : i32
    return %arg0, %c0_i32 : i32, i32
  }
}

</mosaic_0001>

<bundles_post_ra>
// kernel: encoder_forward.1
= control target key start
LH: loop header
LB: loop body
LE: loop exit
PB: predicated region body
PF: predicated region fallthrough
CT: control target
= control target key end

     0   :  { %10 = vsyncpa [#allocation3], 0  ;;  %s1410_s0 = inlined_call_operand.vmem [shape: f32[2,1024], index: 0, kind: input, shape index: {}]   ;;  %s1411_s1 = inlined_call_operand.hbm [shape: bf16[1024,128], index: 1, kind: input, shape index: {}]   ;;  %s1412_s2 = inlined_call_operand.vmem [shape: f32[1,128], index: 2, kind: input, shape index: {}]   ;;  %s1413_s3 = inlined_call_operand.vmem [shape: bf16[128,8], index: 3, kind: input, shape index: {}]   ;;  %s1414_s4 = inlined_call_operand.vmem [shape: f32[1,8], index: 4, kind: input, shape index: {}]   ;;  %s1415_s5 = inlined_call_operand.hbm [shape: f32[2,8], index: 5, kind: output, shape index: {}]  }
   0x1   :  { %11 = vsyncpa [#allocation4], 0  ;;  %s1283_s18 = smov [#allocation2]   ;;  %s1235_s22 = scalar_lea.hbm %s1411_s1, 8192 }
   0x2   :  { %s19_s19 = sshll.u32 %s1283_s18, 4  ;;  %p1236_p0 = scmp.ne.s32.totalorder %s1411_s1, %s1235_s22  ;;  %s20_s19 = int_to_ptr.vmem [resolvable:$true] %s19_s19 }
   0x3   :  { %p1239_p1 = scmp.lt.u32.totalorder %s1235_s22, %s1411_s1 }
   0x5   :  { %p1241_p2 = pnand %p1239_p1, %p1236_p0 }
   0x7   :  { %1244 = shalt.err (!%p1241_p2)
}
   0x8   :  { %s1245_s27 = scalar_lea.vmem %s20_s19, 8192  ;;  %p1250_p4 = scmp.lt.s32.totalorder %s20_s19, %s20_s19 }
   0x9   :  { %p1246_p3 = scmp.ne.s32.totalorder %s20_s19, %s1245_s27  ;;  %p1251_p5 = scmp.lt.s32.totalorder %s1245_s27, %s1245_s27 }
   0xb   :  { %p1252_p6 = por %p1251_p5, %p1250_p4 }
   0xd   :  { %p1253_p7 = pnand %p1252_p6, %p1246_p3 }
   0xf   :  { %1256 = shalt.err (!%p1253_p7)
}
  0x10   :  { %s1284_s28 = smov 64   ;;  %s1285_s29 = smov 4  }
  0x11   :  { %25 = dma.hbm_to_vmem [thread:$0]  %s1411_s1, 8192, %s20_s19, [#allocation3], %s1284_s28, %s1284_s28, %s1285_s29  }
  0x12   :  { %1279 = dma.done.wait [#allocation3], 8192  }
  0x13   :  { %1280 = vsyncadd [#allocation3], 4294959104  ;;  %v1151_v0 = vld [vmem:[#allocation2 + $0x40] sm:$0xff]   ;;  %v1155_v4 = vld [vmem:[#allocation2 + $0x48] sm:$0xff]   ;;  %v1286_v24 = vmov 1983009808   ;;  %v59_v26 = vlaneseq }
  0x14   :  { %v1152_v1 = vld [vmem:[#allocation2 + $0xc0] sm:$0xff]   ;;  %1025 = vmatprep.subr.bf16.mxu0 %v1151_v0  ;;  %v1156_v5 = vld [vmem:[#allocation2 + $0xc8] sm:$0xff]   ;;  %v1159_v8 = vld [vmem:[#allocation2 + $0x50] sm:$0xff]   ;;  %v57_v25 = vunpack.c.l.s4 %v1286_v24  ;;  %vm1288_vm0 = vmmov 0   ;;  %vm932_vm1 = vcmask 64512  }
  0x15   :  { %v1153_v2 = vld [vmem:[#allocation2] sm:$0xff]   ;;  %1047 = vmatprep.subr.bf16.mxu1 %v1152_v1  ;;  %v1157_v6 = vld [vmem:[#allocation2 + $0x8] sm:$0xff]   ;;  %v1160_v9 = vld [vmem:[#allocation2 + $0xd0] sm:$0xff]   ;;  %v60_v32 = vshrl.u32 %v59_v26, 7 }
  0x16   :  { %v1154_v3 = vld [vmem:[#allocation2 + $0x80] sm:$0xff]   ;;  %1026 = vmatpush3.bf16.msra.mxu0 %v1153_v2  ;;  %v1158_v7 = vld [vmem:[#allocation2 + $0x88] sm:$0xff]   ;;  %v1161_v10 = vld [vmem:[#allocation2 + $0x10] sm:$0xff]   ;;  %v58_v31 = vunpack.c.0.s8 %v57_v25 }
  0x17   :  { %1048 = vmatpush3.bf16.msra.mxu1 %v1154_v3  ;;  %1027 = vmatprep.subr.bf16.mxu0 %v1155_v4  ;;  %v1162_v11 = vld [vmem:[#allocation2 + $0x90] sm:$0xff]   ;;  %v1163_v12 = vld [vmem:[#allocation2 + $0x58] sm:$0xff]   ;;  %v1167_v16 = vld [vmem:[#allocation2 + $0x60] sm:$0xff]  }
  0x18   :  { %1049 = vmatprep.subr.bf16.mxu1 %v1156_v5  ;;  %v1164_v13 = vld [vmem:[#allocation2 + $0xd8] sm:$0xff]   ;;  %v1168_v17 = vld [vmem:[#allocation2 + $0xe0] sm:$0xff]   ;;  %v1171_v20 = vld [vmem:[#allocation2 + $0x68] sm:$0xff]   ;;  %v1334_v37 = vsub.s32 %v58_v31, %v60_v32 }
  0x19   :  { %v1165_v14 = vld [vmem:[#allocation2 + $0x18] sm:$0xff]   ;;  %v1169_v18 = vld [vmem:[#allocation2 + $0x20] sm:$0xff]   ;;  %v1172_v21 = vld [vmem:[#allocation2 + $0xe8] sm:$0xff]  }
  0x1a   :  { %1028 = vmatpush3.bf16.msra.mxu0 %v1157_v6  ;;  %v1166_v15 = vld [vmem:[#allocation2 + $0x98] sm:$0xff]   ;;  %v1170_v19 = vld [vmem:[#allocation2 + $0xa0] sm:$0xff]   ;;  %v1173_v22 = vld [vmem:[#allocation2 + $0x28] sm:$0xff]  }
  0x1b   :  { %1050 = vmatpush3.bf16.msra.mxu1 %v1158_v7  ;;  %1029 = vmatprep.subr.bf16.mxu0 %v1159_v8  ;;  %v1174_v23 = vld [vmem:[#allocation2 + $0xa8] sm:$0xff]   ;;  %v1175_v27 = vld [vmem:[#allocation2 + $0x70] sm:$0xff]   ;;  %v1179_v33 = vld [vmem:[#allocation2 + $0x78] sm:$0xff]  }
  0x1c   :  { %1051 = vmatprep.subr.bf16.mxu1 %v1160_v9  ;;  %v1176_v28 = vld [vmem:[#allocation2 + $0xf0] sm:$0xff]   ;;  %v1180_v34 = vld [vmem:[#allocation2 + $0xf8] sm:$0xff]   ;;  %v1189_v44 = vld [vmem:[#allocation2 + $0x140] sm:$0xff]  }
  0x1d   :  { %v1177_v29 = vld [vmem:[#allocation2 + $0x30] sm:$0xff]   ;;  %v1181_v35 = vld [vmem:[#allocation2 + $0x38] sm:$0xff]   ;;  %v1190_v47 = vld [vmem:[#allocation2 + $0x1c0] sm:$0xff]  }
  0x1e   :  { %1030 = vmatpush3.bf16.msra.mxu0 %v1161_v10  ;;  %v1178_v30 = vld [vmem:[#allocation2 + $0xb0] sm:$0xff]   ;;  %v1182_v36 = vld [vmem:[#allocation2 + $0xb8] sm:$0xff]   ;;  %v1191_v50 = vld [vmem:[#allocation2 + $0x100] sm:$0xff]  }
  0x1f   :  { %1052 = vmatpush3.bf16.msra.mxu1 %v1162_v11  ;;  %1031 = vmatprep.subr.bf16.mxu0 %v1163_v12  ;;  %v1183_v38 = vld [vmem:[%s1410_s0] ss:$16 sps:$4 sm:$0xff]   ;;  %v1187_v40 = vld [vmem:[%s1410_s0 + $0x4] ss:$16 sps:$4 sm:$0xff]   ;;  %v1193_v56 = vld [vmem:[#allocation2 + $0x148] sm:$0xff]  }
  0x20   :  { %1053 = vmatprep.subr.bf16.mxu1 %v1164_v13  ;;  %v1185_v39 = vld [vmem:[%s1410_s0 + $0x20] ss:$16 sps:$4 sm:$0xff]   ;;  %v1188_v41 = vld [vmem:[%s1410_s0 + $0x24] ss:$16 sps:$4 sm:$0xff]   ;;  %v62_v42 = vrot.slane %v1183_v38, %v1334_v37  ;;  %v69_v45 = vrot.slane %v1187_v40, %v1334_v37  ;;  %v1194_v59 = vld [vmem:[#allocation2 + $0x1c8] sm:$0xff]   ;;  %v1287_v40 = vmov 0.0  }
  0x21   :  { %v76_v43 = vrot.slane %v1185_v39, %v1334_v37  ;;  %v83_v46 = vrot.slane %v1188_v41, %v1334_v37  ;;  %v1192_v53 = vld [vmem:[#allocation2 + $0x180] sm:$0xff]   ;;  %v1195_v60 = vld [vmem:[#allocation2 + $0x108] sm:$0xff]   ;;  %v1197_v62 = vld [vmem:[#allocation2 + $0x150] sm:$0xff]  }
  0x22   :  { %1032 = vmatpush3.bf16.msra.mxu0 %v1165_v14  ;;  %v1196_v61 = vld [vmem:[#allocation2 + $0x188] sm:$0xff]   ;;  %v1198_v63 = vld [vmem:[#allocation2 + $0x1d0] sm:$0xff]   ;;  %v1201_v2 = vld [vmem:[#allocation2 + $0x158] sm:$0xff]  }
  0x23   :  { %1054 = vmatpush3.bf16.msra.mxu1 %v1166_v15  ;;  %1033 = vmatprep.subr.bf16.mxu0 %v1167_v16  ;;  %v85_v48 = vcombine.high %v62_v42, %v76_v43  ;;  %v84_v49 = vcombine.low %v62_v42, %v76_v43  ;;  %v87_v51 = vcombine.high %v69_v45, %v83_v46  ;;  %v1199_v0 = vld [vmem:[#allocation2 + $0x110] sm:$0xff]   ;;  %v1202_v3 = vld [vmem:[#allocation2 + $0x1d8] sm:$0xff]   ;;  %v1205_v6 = vld [vmem:[#allocation2 + $0x160] sm:$0xff]  }
  0x24   :  { %1055 = vmatprep.subr.bf16.mxu1 %v1168_v17  ;;  %v86_v52 = vcombine.low %v69_v45, %v83_v46  ;;  %v1200_v1 = vld [vmem:[#allocation2 + $0x190] sm:$0xff]   ;;  %v1203_v4 = vld [vmem:[#allocation2 + $0x118] sm:$0xff]   ;;  %v1206_v7 = vld [vmem:[#allocation2 + $0x1e0] sm:$0xff]  }
  0x25   :  { %v133_v54 = vpack.c.bf16 %v85_v48, %v85_v48  ;;  %v132_v55 = vpack.c.bf16 %v84_v49, %v84_v49  ;;  %v135_v57 = vpack.c.bf16 %v87_v51, %v87_v51  ;;  %v1204_v5 = vld [vmem:[#allocation2 + $0x198] sm:$0xff]   ;;  %v1207_v8 = vld [vmem:[#allocation2 + $0x120] sm:$0xff]   ;;  %v1209_v10 = vld [vmem:[#allocation2 + $0x168] sm:$0xff]  }
  0x26   :  { %1034 = vmatpush3.bf16.msra.mxu0 %v1169_v18  ;;  %v134_v58 = vpack.c.bf16 %v86_v52, %v86_v52  ;;  %v1208_v9 = vld [vmem:[#allocation2 + $0x1a0] sm:$0xff]   ;;  %v1210_v11 = vld [vmem:[#allocation2 + $0x1e8] sm:$0xff]   ;;  %v1213_v14 = vld [vmem:[#allocation2 + $0x170] sm:$0xff]  }
  0x27   :  { %1056 = vmatpush3.bf16.msra.mxu1 %v1170_v19  ;;  %1035 = vmatprep.subr.bf16.mxu0 %v1171_v20  ;;  %v1211_v12 = vld [vmem:[#allocation2 + $0x128] sm:$0xff]   ;;  %v1214_v15 = vld [vmem:[#allocation2 + $0x1f0] sm:$0xff]   ;;  %v1217_v18 = vld [vmem:[#allocation2 + $0x178] sm:$0xff]  }
  0x28   :  { %1057 = vmatprep.subr.bf16.mxu1 %v1172_v21  ;;  %691 = vmatprep.mubr.bf16.mxu0 %v133_v54  ;;  %v1212_v13 = vld [vmem:[#allocation2 + $0x1a8] sm:$0xff]   ;;  %v1215_v16 = vld [vmem:[#allocation2 + $0x130] sm:$0xff]   ;;  %v1218_v19 = vld [vmem:[#allocation2 + $0x1f8] sm:$0xff]  }
  0x29   :  { %731 = vmatprep.mubr.bf16.mxu1 %v135_v57  ;;  %v1216_v17 = vld [vmem:[#allocation2 + $0x1b0] sm:$0xff]   ;;  %v1219_v20 = vld [vmem:[#allocation2 + $0x138] sm:$0xff]   ;;  %v1227_v39 = vld [vmem:[%s1413_s3] sm:$0xff]  }
  0x2a   :  { %1036 = vmatpush3.bf16.msra.mxu0 %v1173_v22  ;;  %v1220_v21 = vld [vmem:[#allocation2 + $0x1b8] sm:$0xff]   ;;  %v1229_v41 = vld [vmem:[%s1413_s3 + $0x10] sm:$0xff]   ;;  %v1231_v43 = vld [vmem:[%s1413_s3 + $0x20] sm:$0xff]  }
  0x2b   :  { %1058 = vmatpush3.bf16.msra.mxu1 %v1174_v23  ;;  %1037 = vmatprep.subr.bf16.mxu0 %v1175_v27  ;;  %v1221_v22 = vld [vmem:[%s1410_s0 + $0x8] ss:$16 sps:$4 sm:$0xff]   ;;  %v1225_v24 = vld [vmem:[%s1410_s0 + $0xc] ss:$16 sps:$4 sm:$0xff]   ;;  %v1233_v45 = vld [vmem:[%s1413_s3 + $0x30] sm:$0xff]  }
  0x2c   :  { %1059 = vmatprep.subr.bf16.mxu1 %v1176_v28  ;;  %v1223_v23 = vld [vmem:[%s1410_s0 + $0x28] ss:$16 sps:$4 sm:$0xff]   ;;  %v1226_v25 = vld [vmem:[%s1410_s0 + $0x2c] ss:$16 sps:$4 sm:$0xff]   ;;  %v98_v26 = vrot.slane %v1221_v22, %v1334_v37  ;;  %v105_v28 = vrot.slane %v1225_v24, %v1334_v37  ;;  %v951_v49 = vld [vmem:[%s1412_s2] ss:$0 sm:$0xff] }
  0x2d   :  { %v112_v27 = vrot.slane %v1223_v23, %v1334_v37  ;;  %v1230_v42 = vld [vmem:[%s1413_s3 + $0x18] sm:$0xff]  }
  0x2e   :  { %1038 = vmatpush3.bf16.msra.mxu0 %v1177_v29  ;;  %v119_v29 = vrot.slane %v1226_v25, %v1334_v37  ;;  %v1228_v37 = vld [vmem:[%s1413_s3 + $0x8] sm:$0xff]   ;;  %v1234_v46 = vld [vmem:[%s1413_s3 + $0x38] sm:$0xff]  }
  0x2f   :  { %1060 = vmatpush3.bf16.msra.mxu1 %v1178_v30  ;;  %1039 = vmatprep.subr.bf16.mxu0 %v1179_v33  ;;  %v121_v30 = vcombine.high %v98_v26, %v112_v27  ;;  %v120_v31 = vcombine.low %v98_v26, %v112_v27 }
  0x30   :  { %1061 = vmatprep.subr.bf16.mxu1 %v1180_v34  ;;  %v123_v32 = vcombine.high %v105_v28, %v119_v29  ;;  %v122_v33 = vcombine.low %v105_v28, %v119_v29 }
  0x31   :  { %v137_v34 = vpack.c.bf16 %v121_v30, %v121_v30 }
  0x32   :  { %1040 = vmatpush3.bf16.msra.mxu0 %v1181_v35  ;;  %v136_v35 = vpack.c.bf16 %v120_v31, %v120_v31  ;;  %v138_v38 = vpack.c.bf16 %v122_v33, %v122_v33 }
  0x33   :  { %1062 = vmatpush3.bf16.msra.mxu1 %v1182_v36  ;;  %1069 = vmatprep.subr.bf16.mxu0 %v1189_v44  ;;  %v139_v36 = vpack.c.bf16 %v123_v32, %v123_v32  ;;  %v1232_v44 = vld [vmem:[%s1413_s3 + $0x28] sm:$0xff]  }
  0x34   :  { %1091 = vmatprep.subr.bf16.mxu1 %v1190_v47 }
  0x35   :  { %692 = vmatmul.mubr.bf16.vlgmr.msra.gmra.mrb[0].mxu0 %v132_v55 }
  0x36   :  { %732 = vmatmul.mubr.bf16.vlgmr.msra.gmra.mrb[0].mxu1 %v134_v58  ;;  %1070 = vmatpush3.bf16.msra.mxu0 %v1191_v50 }
  0x37   :  { %1092 = vmatpush3.bf16.msra.mxu1 %v1192_v53  ;;  %1071 = vmatprep.subr.bf16.mxu0 %v1193_v56 }
  0x38   :  { %1093 = vmatprep.subr.bf16.mxu1 %v1194_v59  ;;  %771 = vmatprep.mubr.bf16.mxu0 %v137_v34 }
  0x39   :  { %811 = vmatprep.mubr.bf16.mxu1 %v139_v36 }
  0x3a   :  { %1072 = vmatpush3.bf16.msra.mxu0 %v1195_v60 }
  0x3b   :  { %1094 = vmatpush3.bf16.msra.mxu1 %v1196_v61  ;;  %1073 = vmatprep.subr.bf16.mxu0 %v1197_v62 }
  0x3c   :  { %1095 = vmatprep.subr.bf16.mxu1 %v1198_v63 }
  0x3e   :  { %1074 = vmatpush3.bf16.msra.mxu0 %v1199_v0 }
  0x3f   :  { %1096 = vmatpush3.bf16.msra.mxu1 %v1200_v1  ;;  %1075 = vmatprep.subr.bf16.mxu0 %v1201_v2 }
  0x40   :  { %1097 = vmatprep.subr.bf16.mxu1 %v1202_v3 }
  0x42   :  { %1076 = vmatpush3.bf16.msra.mxu0 %v1203_v4 }
  0x43   :  { %1098 = vmatpush3.bf16.msra.mxu1 %v1204_v5  ;;  %1077 = vmatprep.subr.bf16.mxu0 %v1205_v6 }
  0x44   :  { %1099 = vmatprep.subr.bf16.mxu1 %v1206_v7 }
  0x46   :  { %1078 = vmatpush3.bf16.msra.mxu0 %v1207_v8 }
  0x47   :  { %1100 = vmatpush3.bf16.msra.mxu1 %v1208_v9  ;;  %1079 = vmatprep.subr.bf16.mxu0 %v1209_v10  ;;  %v1016_v10 = vld [vmem:[%s1414_s4] ss:$0 sm:$0xff] }
  0x48   :  { %1101 = vmatprep.subr.bf16.mxu1 %v1210_v11 }
  0x4a   :  { %1080 = vmatpush3.bf16.msra.mxu0 %v1211_v12 }
  0x4b   :  { %1102 = vmatpush3.bf16.msra.mxu1 %v1212_v13  ;;  %1081 = vmatprep.subr.bf16.mxu0 %v1213_v14 }
  0x4c   :  { %1103 = vmatprep.subr.bf16.mxu1 %v1214_v15 }
  0x4e   :  { %1082 = vmatpush3.bf16.msra.mxu0 %v1215_v16 }
  0x4f   :  { %1104 = vmatpush3.bf16.msra.mxu1 %v1216_v17  ;;  %1083 = vmatprep.subr.bf16.mxu0 %v1217_v18 }
  0x50   :  { %1105 = vmatprep.subr.bf16.mxu1 %v1218_v19 }
  0x52   :  { %1084 = vmatpush3.bf16.msra.mxu0 %v1219_v20 }
  0x53   :  { %1106 = vmatpush3.bf16.msra.mxu1 %v1220_v21  ;;  %1122 = vmatprep.subr.bf16.mxu0 %v1287_v40 }
  0x55   :  { %772 = vmatmul.mubr.bf16.vlgmr.msra.gmra.mrb[4].mxu0 %v136_v35 }
  0x56   :  { %812 = vmatmul.mubr.bf16.vlgmr.msra.gmra.mrb[4].mxu1 %v138_v38  ;;  %1123 = vmatpush3.bf16.msra.mxu0 %v1227_v39 }
  0x57   :  { %1124 = vmatprep.subr.bf16.mxu0 %v1287_v40  ;;  %1138 = vmatprep.mubr.msk.bf16.mxu0 %vm1288_vm0, %v1287_v40 }
  0x5a   :  { %1125 = vmatpush3.bf16.msra.mxu0 %v1228_v37 }
  0x5b   :  { %1126 = vmatprep.subr.bf16.mxu0 %v1287_v40 }
  0x5e   :  { %1127 = vmatpush3.bf16.msra.mxu0 %v1229_v41 }
  0x5f   :  { %1128 = vmatprep.subr.bf16.mxu0 %v1287_v40 }
  0x62   :  { %1129 = vmatpush3.bf16.msra.mxu0 %v1230_v42 }
  0x63   :  { %1130 = vmatprep.subr.bf16.mxu0 %v1287_v40 }
  0x66   :  { %1131 = vmatpush3.bf16.msra.mxu0 %v1231_v43 }
  0x67   :  { %1132 = vmatprep.subr.bf16.mxu0 %v1287_v40 }
  0x6a   :  { %1133 = vmatpush3.bf16.msra.mxu0 %v1232_v44 }
  0x6b   :  { %1134 = vmatprep.subr.bf16.mxu0 %v1287_v40 }
  0x6e   :  { %1135 = vmatpush3.bf16.msra.mxu0 %v1233_v45 }
  0x6f   :  { %1136 = vmatprep.subr.bf16.mxu0 %v1287_v40 }
  0x72   :  { %1137 = vmatpush3.bf16.msra.mxu0 %v1234_v46 }
 0x108   :  { %v1041_v47 = vpop.f32.mrb[0].mxu0 }
 0x109   :  { %v1063_v48 = vpop.f32.mrb[0].mxu1  ;;  %v1042_v50 = vpop.f32.mrb[1].mxu0 }
 0x10a   :  { %v1043_v51 = vadd.f32 %v1042_v50, %v1041_v47  ;;  %v1064_v52 = vpop.f32.mrb[1].mxu1  ;;  %v1044_v53 = vpop.f32.mrb[2].mxu0 }
 0x10b   :  { %v1065_v54 = vadd.f32 %v1064_v52, %v1063_v48  ;;  %v1066_v55 = vpop.f32.mrb[2].mxu1  ;;  %v1045_v56 = vpop.f32.mrb[3].mxu0 }
 0x10c   :  { %v694_v57 = vadd.f32 %v1043_v51, %v951_v49  ;;  %v1067_v58 = vpop.f32.mrb[3].mxu1 }
 0x10e   :  { %v734_v59 = vadd.f32 %v1065_v54, %v694_v57 }
 0x128   :  { %v1085_v60 = vpop.f32.mrb[4].mxu0 }
 0x129   :  { %v1107_v61 = vpop.f32.mrb[4].mxu1  ;;  %v1086_v62 = vpop.f32.mrb[5].mxu0 }
 0x12a   :  { %v1087_v63 = vadd.f32 %v1086_v62, %v1085_v60  ;;  %v1108_v0 = vpop.f32.mrb[5].mxu1  ;;  %v1088_v1 = vpop.f32.mrb[6].mxu0 }
 0x12b   :  { %v1109_v2 = vadd.f32 %v1108_v0, %v1107_v61  ;;  %v1110_v3 = vpop.f32.mrb[6].mxu1  ;;  %v1089_v4 = vpop.f32.mrb[7].mxu0 }
 0x12c   :  { %v774_v5 = vadd.f32 %v1087_v63, %v734_v59  ;;  %v1111_v6 = vpop.f32.mrb[7].mxu1 }
 0x12e   :  { %v814_v7 = vadd.f32 %v1109_v2, %v774_v5 }
 0x130   :  { %v819_v8 = vmax.f32 %v814_v7, 0.0 }
 0x132   :  { %v820_v9 = vpack.c.bf16 %v819_v8, %v819_v8 }
 0x134   :  { %1139 = vmatmul.mubr.bf16.vlgmr.msra.gmra.mrb[8].mxu0 %v820_v9 }
 0x207   :  { %v926_v11 = vpop.f32.mrb[8].mxu0 }
 0x208   :  { %v927_v12 = vadd.f32 %v1016_v10, %v926_v11  ;;  %v1140_v13 = vpop.f32.mrb[9].mxu0 }
 0x209   :  { %v929_v14 = vpop.f32.mrb[10].mxu0 }
 0x20a   :  { %933 = vst.msk [vmem:[#allocation5] sm:$0xff] %vm932_vm1, %v927_v12  ;;  %v1141_v15 = vpop.f32.mrb[11].mxu0 }
 0x20b   :  { %938 = vsyncadd [#allocation4], 96  ;;  %s1289_s13 = smov [#allocation5]  }
 0x20c   :  { %s939_s14 = sshll.u32 %s1289_s13, 4  ;;  %s940_s14 = int_to_ptr.vmem [resolvable:$true] %s939_s14 }
 0x20d   :  { %s1257_s15 = scalar_lea.vmem %s940_s14, 32  ;;  %s1261_s16 = scalar_lea.vmem %s940_s14, 128 }
 0x20e   :  { %p1258_p8 = scmp.ne.s32.totalorder %s940_s14, %s1257_s15  ;;  %p1262_p9 = scmp.lt.s32.totalorder %s940_s14, %s940_s14 }
 0x20f   :  { %p1263_p10 = scmp.lt.s32.totalorder %s1261_s16, %s1257_s15 }
 0x211   :  { %p1264_p11 = por %p1263_p10, %p1262_p9 }
 0x213   :  { %p1265_p12 = pnand %p1264_p11, %p1258_p8 }
 0x215   :  { %1268 = shalt.err (!%p1265_p12)
}
 0x216   :  { %s1269_s18 = scalar_lea.hbm %s1415_s5, 32 }
 0x217   :  { %p1270_p13 = scmp.ne.s32.totalorder %s1415_s5, %s1269_s18  ;;  %p1273_p0 = scmp.lt.u32.totalorder %s1269_s18, %s1415_s5 }
 0x219   :  { %p1275_p1 = pnand %p1273_p0, %p1270_p13 }
 0x21b   :  { %1278 = shalt.err (!%p1275_p1)
}
 0x21c   :  { %s1290_s22 = smov 32   ;;  %s1291_s23 = smov 2  }
 0x21d   :  { %945 = dma.vmem_to_hbm [thread:$0]  %s940_s14, 32, %s1415_s5, [#allocation4], %s1290_s22, %s1290_s22, %s1291_s23  }
 0x21e   :  { %1281 = dma.done.wait [#allocation4], 128  }
 0x21f   :  { %1282 = vsyncadd [#allocation4], 4294967168 }
 0x220   :  { %949 = vsyncpa [#allocation3], 1 }
 0x221   :  { %950 = vsyncpa [#allocation4], 1 }

</bundles_post_ra>
